<compile_context>
chip_gen: v7x
topology: tpu7x:2x2x1
jax: 0.10.0
libtpu: 0.0.40
codegen_flags: <defaults>
</compile_context>

<pallas_src>
import jax
import jax.numpy as jnp
from jax.experimental import pallas as pl
from jax.experimental.pallas import tpu as pltpu


def _round_up(x, m):
    return ((x + m - 1) // m) * m


def fm_fused_kernel(ids_t_ref, table_t_ref, out_ref):
    """Fused embedding gather + FM second-order interaction.

    ids_t_ref   : (F, TB)   int32 feature ids, batch on the lane axis
    table_t_ref : (D, Nf)   embedding table, transposed; same block every grid
                            step -> DMA'd into VMEM once
    out_ref     : (1, TB)   lane-dense FM logits for this batch tile
    """
    ids_t = ids_t_ref[...]                                  # (F, TB) int32
    tbl_t = table_t_ref[...].astype(jnp.float32)            # (D, Nf)
    num_fields, _ = ids_t.shape
    n_feat = tbl_t.shape[1]
    tb = ids_t.shape[1]

    # counts_t[j, b] = #{f : ids[b, f] == j}   (one-hot accumulated over fields)
    feat_iota = jax.lax.broadcasted_iota(jnp.int32, (n_feat, tb), 0)
    counts_t = jnp.zeros((n_feat, tb), jnp.float32)
    for f in range(num_fields):                             # static, small unrolled loop
        counts_t = counts_t + (feat_iota == ids_t[f:f + 1, :]).astype(jnp.float32)

    # Gather + sum over fields as two MXU matmuls (exact: counts are small ints).
    sum_emb_t = jnp.dot(tbl_t, counts_t,
                        preferred_element_type=jnp.float32)          # (D, TB)
    sum_sq_t = jnp.dot(tbl_t * tbl_t, counts_t,
                       preferred_element_type=jnp.float32)           # (D, TB)

    ix_t = sum_emb_t * sum_emb_t - sum_sq_t                          # (D, TB)
    # Sublane reduction over D yields a lane-dense (1, TB) row -> dense store.
    out_ref[...] = 0.5 * jnp.sum(ix_t, axis=0, keepdims=True)


def fm_pallas(x_ids, emb_table, *, max_tile_b=1024):
    """x_ids: (B, F) int ids, emb_table: (feature, dim) -> (B, 1) f32 logits."""
    B, F = x_ids.shape
    n_feat, dim = emb_table.shape

    tile_b = min(max_tile_b, _round_up(B, 8))
    b_pad = _round_up(B, tile_b)
    n_tiles = b_pad // tile_b

    ids = x_ids.astype(jnp.int32)
    if b_pad != B:
        # Pad ragged batches with id 0 (a valid row); results are sliced off.
        ids = jnp.pad(ids, ((0, b_pad - B), (0, 0)))
    ids_t = ids.T                                    # (F, b_pad): batch on lanes
    table_t = emb_table.T                            # (dim, n_feat), VMEM-resident

    out = pl.pallas_call(
        fm_fused_kernel,
        out_shape=jax.ShapeDtypeStruct((n_tiles, tile_b), jnp.float32),
        grid=(n_tiles,),
        in_specs=[
            pl.BlockSpec((F, tile_b), lambda i: (0, i)),       # ids tile
            pl.BlockSpec((dim, n_feat), lambda i: (0, 0)),     # full table, fetched once
        ],
        out_specs=pl.BlockSpec((1, tile_b), lambda i: (i, 0)),  # lane-dense output row
        compiler_params=pltpu.CompilerParams(
            dimension_semantics=("parallel",),
        ),
    )(ids_t, table_t)

    return out.reshape(b_pad, 1)[:B]                 # tiles are batch-ordered


def fm_forward(x_ids, emb_table):
    """Full BasicModel/FM forward: fused embedding lookup + FM reduction."""
    return fm_pallas(x_ids, emb_table)


def fm_reference(x_ids, emb_table):
    """Pure-JAX reference matching the PyTorch module exactly."""
    e = jnp.take(emb_table.astype(jnp.float32), x_ids, axis=0)   # (B, F, D)
    square_of_sum = jnp.sum(e, axis=1) ** 2
    sum_of_square = jnp.sum(e ** 2, axis=1)
    ix = square_of_sum - sum_of_square
    return 0.5 * jnp.sum(ix, axis=-1, keepdims=True)


if __name__ == "__main__":
    # Small synthetic config (args.feature, args.field, args.dim)
    feature_num = 10
    field_num = 4
    latent_dim = 32

    key = jax.random.PRNGKey(0)
    k_emb, k_x1, k_x2 = jax.random.split(key, 3)

    # Deterministic embedding table (nn.Embedding(feature_num, latent_dim))
    emb_table = jax.random.normal(k_emb, (feature_num, latent_dim),
                                  dtype=jnp.float32) * 0.1

    # Tolerance allows for possible reduced-precision f32 MXU passes; the FM
    # identity itself is exact.
    tol = dict(atol=2e-3, rtol=2e-3)

    # --- small demo batch -------------------------------------------------
    batch = 8
    x_ids = jax.random.randint(k_x1, (batch, field_num), 0, feature_num,
                               dtype=jnp.int32)
    logit = jax.block_until_ready(fm_forward(x_ids, emb_table))
    ref = fm_reference(x_ids, emb_table)
    assert logit.shape == (batch, 1)
    assert jnp.allclose(logit, ref, **tol), float(jnp.max(jnp.abs(logit - ref)))

    # --- larger ragged batch: multi-tile grid, 1024-wide lane-dense tiles --
    batch2 = 2053
    x_ids2 = jax.random.randint(k_x2, (batch2, field_num), 0, feature_num,
                                dtype=jnp.int32)
    logit2 = jax.block_until_ready(fm_forward(x_ids2, emb_table))
    ref2 = fm_reference(x_ids2, emb_table)
    assert logit2.shape == (batch2, 1)
    assert jnp.allclose(logit2, ref2, **tol), float(jnp.max(jnp.abs(logit2 - ref2)))

    print("KERNEL_OK")
</pallas_src>

<mosaic_0001>
module attributes {stable_mosaic.version = 11 : i64} {
  func.func @fm_fused_kernel(%arg0: i32, %arg1: memref<4x8xi32, #tpu.memory_space<vmem>>, %arg2: memref<32x10xf32, #tpu.memory_space<vmem>>, %arg3: memref<1x8xf32, #tpu.memory_space<vmem>>) attributes {dimension_semantics = [#tpu.dimension_semantics<parallel>], iteration_bounds = array<i64: 1>, scalar_prefetch = 0 : i64, scratch_operands = 0 : i64, tpu.core_type = #tpu.core_type<tc>, window_params = [{transform_indices = @transform_0, window_bounds = array<i64: 4, 8>}, {pipeline_mode = #tpu.pipeline_mode<synchronous>, transform_indices = @transform_1, window_bounds = array<i64: 32, 10>}, {transform_indices = @transform_2, window_bounds = array<i64: 1, 8>}]} {
    %c0 = arith.constant 0 : index
    %c0_0 = arith.constant 0 : index
    %0 = vector.load %arg1[%c0, %c0_0] : memref<4x8xi32, #tpu.memory_space<vmem>>, vector<4x8xi32>
    %c0_1 = arith.constant 0 : index
    %c0_2 = arith.constant 0 : index
    %1 = vector.load %arg2[%c0_1, %c0_2] : memref<32x10xf32, #tpu.memory_space<vmem>>, vector<32x10xf32>
    %2 = tpu.iota {dimensions = array<i32: 0>} : vector<10x8xi32>
    %cst = arith.constant 0.000000e+00 : f32
    %3 = vector.broadcast %cst : f32 to vector<10x8xf32>
    %4 = vector.extract_strided_slice %0 {offsets = [0, 0], sizes = [1, 8], strides = [1, 1]} : vector<4x8xi32> to vector<1x8xi32>
    %5 = vector.broadcast %4 : vector<1x8xi32> to vector<10x8xi32>
    %6 = arith.cmpi eq, %2, %5 : vector<10x8xi32>
    %7 = arith.extui %6 : vector<10x8xi1> to vector<10x8xi32>
    %8 = arith.sitofp %7 : vector<10x8xi32> to vector<10x8xf32>
    %9 = arith.addf %3, %8 : vector<10x8xf32>
    %10 = vector.extract_strided_slice %0 {offsets = [1, 0], sizes = [1, 8], strides = [1, 1]} : vector<4x8xi32> to vector<1x8xi32>
    %11 = vector.broadcast %10 : vector<1x8xi32> to vector<10x8xi32>
    %12 = arith.cmpi eq, %2, %11 : vector<10x8xi32>
    %13 = arith.extui %12 : vector<10x8xi1> to vector<10x8xi32>
    %14 = arith.sitofp %13 : vector<10x8xi32> to vector<10x8xf32>
    %15 = arith.addf %9, %14 : vector<10x8xf32>
    %16 = vector.extract_strided_slice %0 {offsets = [2, 0], sizes = [1, 8], strides = [1, 1]} : vector<4x8xi32> to vector<1x8xi32>
    %17 = vector.broadcast %16 : vector<1x8xi32> to vector<10x8xi32>
    %18 = arith.cmpi eq, %2, %17 : vector<10x8xi32>
    %19 = arith.extui %18 : vector<10x8xi1> to vector<10x8xi32>
    %20 = arith.sitofp %19 : vector<10x8xi32> to vector<10x8xf32>
    %21 = arith.addf %15, %20 : vector<10x8xf32>
    %22 = vector.extract_strided_slice %0 {offsets = [3, 0], sizes = [1, 8], strides = [1, 1]} : vector<4x8xi32> to vector<1x8xi32>
    %23 = vector.broadcast %22 : vector<1x8xi32> to vector<10x8xi32>
    %24 = arith.cmpi eq, %2, %23 : vector<10x8xi32>
    %25 = arith.extui %24 : vector<10x8xi1> to vector<10x8xi32>
    %26 = arith.sitofp %25 : vector<10x8xi32> to vector<10x8xf32>
    %27 = arith.addf %21, %26 : vector<10x8xf32>
    %cst_3 = arith.constant dense<0.000000e+00> : vector<32x8xf32>
    %28 = tpu.matmul %1, %27, %cst_3 {dimension_numbers = #tpu.dot_dimension_numbers<[1], [0], [0], [1], [0, 0, 1, 1], [], []>} : vector<32x10xf32>, vector<10x8xf32>, vector<32x8xf32> -> vector<32x8xf32>
    %29 = arith.mulf %1, %1 : vector<32x10xf32>
    %cst_4 = arith.constant dense<0.000000e+00> : vector<32x8xf32>
    %30 = tpu.matmul %29, %27, %cst_4 {dimension_numbers = #tpu.dot_dimension_numbers<[1], [0], [0], [1], [0, 0, 1, 1], [], []>} : vector<32x10xf32>, vector<10x8xf32>, vector<32x8xf32> -> vector<32x8xf32>
    %31 = arith.mulf %28, %28 : vector<32x8xf32>
    %32 = arith.subf %31, %30 : vector<32x8xf32>
    %cst_5 = arith.constant dense<0.000000e+00> : vector<8xf32>
    %33 = vector.multi_reduction <add>, %32, %cst_5 [0] : vector<32x8xf32> to vector<8xf32>
    %34 = vector.shape_cast %33 : vector<8xf32> to vector<1x8xf32>
    %cst_6 = arith.constant 5.000000e-01 : f32
    %35 = vector.broadcast %cst_6 : f32 to vector<1x8xf32>
    %36 = arith.mulf %35, %34 : vector<1x8xf32>
    %c0_7 = arith.constant 0 : index
    %c0_8 = arith.constant 0 : index
    %37 = vector.load %arg3[%c0_7, %c0_8] : memref<1x8xf32, #tpu.memory_space<vmem>>, vector<1x8xf32>
    tpu.vector_store %arg3[%c0_7, %c0_8], %36 {strides = array<i32>} : memref<1x8xf32, #tpu.memory_space<vmem>>, vector<1x8xf32>,
    return
  }
  func.func @transform_0(%arg0: i32) -> (i32, i32) {
    %c0_i32 = arith.constant 0 : i32
    %c0_i32_0 = arith.constant 0 : i32
    return %c0_i32, %arg0 : i32, i32
  }
  func.func @transform_1(%arg0: i32) -> (i32, i32) {
    %c0_i32 = arith.constant 0 : i32
    %c0_i32_0 = arith.constant 0 : i32
    %c0_i32_1 = arith.constant 0 : i32
    return %c0_i32, %c0_i32_0 : i32, i32
  }
  func.func @transform_2(%arg0: i32) -> (i32, i32) {
    %c0_i32 = arith.constant 0 : i32
    %c0_i32_0 = arith.constant 0 : i32
    return %arg0, %c0_i32 : i32, i32
  }
}

</mosaic_0001>

<bundles_post_ra>
// kernel: tpu_custom_call.1
= control target key start
LH: loop header
LB: loop body
LE: loop exit
PB: predicated region body
PF: predicated region fallthrough
CT: control target
= control target key end

     0   :  { %v17_v0 = vlaneseq  ;;  %vm68_vm0 = vcmask 80896   ;;  %s457_s0 = inlined_call_operand.vmem [shape: s32[4,8], index: 0, kind: input, shape index: {}]   ;;  %s458_s1 = inlined_call_operand.vmem [shape: f32[32,10], index: 1, kind: input, shape index: {}]   ;;  %s459_s2 = inlined_call_operand.hbm [shape: f32[1,8], index: 2, kind: output, shape index: {}]  }
   0x1   :  { %v13_v1 = vld [vmem:[%s458_s1] sm:$0xff] }
   0x2   :  { %v170_v2 = vmul.f32 %v13_v1, %v13_v1  ;;  %v18_v3 = vshrl.u32 %v17_v0, 7  ;;  %344 = vmatprep.mubr.msk.f32.mxu0 %vm68_vm0, %v13_v1 }
   0x3   :  { %7 = vsyncpa [#allocation3], 0  ;;  %v12_v4 = vld [vmem:[%s457_s0] sm:$0xf]  ;;  %vm81_vm1 = vcmask 1041408   ;;  %v399_v14 = vmov 0.0  }
   0x4   :  { %354 = vmatprep.mubr.msk.f32.mxu1 %vm68_vm0, %v170_v2  ;;  %v19_v5 = vadd.s32 8, %v18_v3  ;;  %v22_v6 = vsub.s32 0, %v18_v3  ;;  %v34_v7 = vsub.s32 1, %v18_v3  ;;  %v46_v8 = vsub.s32 2, %v18_v3  ;;  %v14_v29 = vld [vmem:[%s458_s1 + $0x8] sm:$0xff]  ;;  %v15_v31 = vld [vmem:[%s458_s1 + $0x10] sm:$0xff] }
   0x5   :  { %v58_v9 = vsub.s32 3, %v18_v3  ;;  %vm400_vm10 = vmmov 1   ;;  %v171_v32 = vmul.f32 %v14_v29, %v14_v29  ;;  %v172_v33 = vmul.f32 %v15_v31, %v15_v31  ;;  %v16_v34 = vld [vmem:[%s458_s1 + $0x18] sm:$0xff]  ;;  %s401_s1 = smov [#allocation2]  }
   0x6   :  { %v23_v10 = vrot.slane %v12_v4, %v22_v6  ;;  %v35_v11 = vrot.slane %v12_v4, %v34_v7  ;;  %v47_v12 = vrot.slane %v12_v4, %v46_v8  ;;  %vm361_vm11 = vmpackc.low %vm81_vm1, %vm400_vm10  ;;  %v173_v35 = vmul.f32 %v16_v34, %v16_v34  ;;  %s302_s18 = sshll.u32 %s401_s1, 4  ;;  %s303_s18 = int_to_ptr.vmem [resolvable:$true] %s302_s18 }
   0x7   :  { %v59_v13 = vrot.slane %v12_v4, %v58_v9  ;;  %vm279_vm12 = vcmask 64512   ;;  %vm294_vm13 = vcmask 57344   ;;  %s375_s19 = scalar_lea.vmem %s303_s18, 16  ;;  %s379_s20 = scalar_lea.vmem %s303_s18, 32 }
   0x8   :  { %vm24_vm2 = vcmp.eq.s32.totalorder %v18_v3, %v23_v10  ;;  %vm25_vm3 = vcmp.eq.s32.totalorder %v19_v5, %v23_v10  ;;  %vm36_vm4 = vcmp.eq.s32.totalorder %v18_v3, %v35_v11  ;;  %vm37_vm5 = vcmp.eq.s32.totalorder %v19_v5, %v35_v11  ;;  %p376_p0 = scmp.ne.s32.totalorder %s303_s18, %s375_s19  ;;  %p380_p1 = scmp.lt.s32.totalorder %s303_s18, %s303_s18 }
   0x9   :  { %v310_v15 = vsel %vm24_vm2, 1.0, %v399_v14  ;;  %v311_v16 = vsel %vm25_vm3, 1.0, %v399_v14  ;;  %v312_v17 = vsel %vm36_vm4, 1.0, %v399_v14  ;;  %v313_v18 = vsel %vm37_vm5, 1.0, %v399_v14  ;;  %p381_p2 = scmp.lt.s32.totalorder %s379_s20, %s375_s19 }
   0xa   :  { %v42_v19 = vadd.f32 %v312_v17, %v310_v15  ;;  %v43_v20 = vadd.f32 %v313_v18, %v311_v16  ;;  %vm48_vm6 = vcmp.eq.s32.totalorder %v18_v3, %v47_v12  ;;  %vm49_vm7 = vcmp.eq.s32.totalorder %v19_v5, %v47_v12 }
   0xb   :  { %v314_v21 = vsel %vm48_vm6, 1.0, %v399_v14  ;;  %v315_v22 = vsel %vm49_vm7, 1.0, %v399_v14  ;;  %vm60_vm8 = vcmp.eq.s32.totalorder %v18_v3, %v59_v13  ;;  %vm61_vm9 = vcmp.eq.s32.totalorder %v19_v5, %v59_v13  ;;  %p382_p3 = por %p381_p2, %p380_p1 }
   0xc   :  { %v54_v23 = vadd.f32 %v314_v21, %v42_v19  ;;  %v55_v24 = vadd.f32 %v315_v22, %v43_v20  ;;  %v316_v25 = vsel %vm60_vm8, 1.0, %v399_v14  ;;  %v317_v26 = vsel %vm61_vm9, 1.0, %v399_v14 }
   0xd   :  { %p383_p4 = pnand %p382_p3, %p376_p0 }
   0xe   :  { %v66_v27 = vadd.f32 %v316_v25, %v54_v23  ;;  %v67_v28 = vadd.f32 %v317_v26, %v55_v24 }
  0x10   :  { %v360_v30 = vpack.c.bf16 %v67_v28, %v66_v27 }
  0x12   :  { %362 = vmatprep.subr.msk.bf16.mxu0 %vm361_vm11, %v360_v30  ;;  %368 = vmatprep.subr.msk.bf16.mxu1 %vm361_vm11, %v360_v30 }
  0x13   :  { %365 = vmatpush3.bf16.msk.msra.mxu0 %vm361_vm11, %v360_v30  ;;  %371 = vmatpush3.bf16.msk.msra.mxu1 %vm361_vm11, %v360_v30 }
  0x16   :  { %345 = vmatmul.mubr.msk.f32.vlgmr.msra.gmra.mrb[0].mxu0 %vm68_vm0, %v14_v29  ;;  %355 = vmatmul.mubr.msk.f32.vlgmr.msra.gmra.mrb[0].mxu1 %vm68_vm0, %v171_v32 }
  0x17   :  { %347 = vmatprep.mubr.msk.f32.mxu0 %vm68_vm0, %v15_v31  ;;  %357 = vmatprep.mubr.msk.f32.mxu1 %vm68_vm0, %v172_v33 }
  0x1a   :  { %348 = vmatmul.mubr.msk.f32.gmra.mrb[2].mxu0 %vm68_vm0, %v16_v34  ;;  %358 = vmatmul.mubr.msk.f32.gmra.mrb[2].mxu1 %vm68_vm0, %v173_v35 }
  0xe9   :  { %v346_v36 = vpop.f32.mrb[0].mxu0  ;;  %v356_v37 = vpop.f32.mrb[0].mxu1 }
  0xea   :  { %v272_v38 = vmul.f32 %v346_v36, %v346_v36  ;;  %v151_v39 = vpop.f32.mrb[1].mxu0  ;;  %v252_v40 = vpop.f32.mrb[1].mxu1 }
  0xeb   :  { %v271_v41 = vmul.f32 %v151_v39, %v151_v39 }
  0xec   :  { %v276_v42 = vsub.f32 %v272_v38, %v356_v37 }
  0xed   :  { %v275_v43 = vsub.f32 %v271_v41, %v252_v40  ;;  %v349_v44 = vpop.f32.mrb[2].mxu0  ;;  %v359_v45 = vpop.f32.mrb[2].mxu1 }
  0xee   :  { %v281_v46 = vsel %vm279_vm12, %v276_v42, 0.0  ;;  %v274_v47 = vmul.f32 %v349_v44, %v349_v44  ;;  %v161_v48 = vpop.f32.mrb[3].mxu0  ;;  %v262_v49 = vpop.f32.mrb[3].mxu1 }
  0xef   :  { %v280_v50 = vsel %vm279_vm12, %v275_v43, 0.0  ;;  %v273_v51 = vmul.f32 %v161_v48, %v161_v48 }
  0xf0   :  { %v282_v52 = vadd.f32 %v281_v46, %v280_v50  ;;  %v278_v53 = vsub.f32 %v274_v47, %v359_v45 }
  0xf1   :  { %v277_v54 = vsub.f32 %v273_v51, %v262_v49 }
  0xf2   :  { %v285_v57 = vsel %vm279_vm12, %v278_v53, 0.0 }
  0xf3   :  { %v283_v55 = vsel %vm279_vm12, %v277_v54, 0.0 }
  0xf4   :  { %v284_v56 = vadd.f32 %v283_v55, %v282_v52 }
  0xf6   :  { %v286_v58 = vadd.f32 %v285_v57, %v284_v56 }
  0xf8   :  { %v287_v59 = vrot.slane %v286_v58, 4 }
  0xfa   :  { %v288_v60 = vadd.f32 %v287_v59, %v286_v58 }
  0xfc   :  { %v289_v61 = vrot.slane %v288_v60, 2 }
  0xfe   :  { %v290_v62 = vadd.f32 %v289_v61, %v288_v60 }
 0x100   :  { %v291_v63 = vrot.slane %v290_v62, 1 }
 0x102   :  { %v292_v0 = vadd.f32 %v291_v63, %v290_v62 }
 0x104   :  { %v293_v1 = vmul.f32 0.5, %v292_v0 }
 0x106   :  { %295 = vst.msk [vmem:[#allocation2] sm:$0x1] %vm294_vm13, %v293_v1 }
 0x107   :  { %386 = shalt.err (!%p383_p4)
}
 0x108   :  { %s387_s23 = scalar_lea.hbm %s459_s2, 16 }
 0x109   :  { %p388_p5 = scmp.ne.s32.totalorder %s459_s2, %s387_s23  ;;  %p391_p6 = scmp.lt.u32.totalorder %s387_s23, %s459_s2 }
 0x10b   :  { %p393_p7 = pnand %p391_p6, %p388_p5 }
 0x10d   :  { %396 = shalt.err (!%p393_p7)
}
 0x10e   :  { %305 = dma.vmem_to_hbm [thread:$0]  %s303_s18, 16, %s459_s2, [#allocation3]  }
 0x10f   :  { %397 = dma.done.wait [#allocation3], 16  }
 0x110   :  { %398 = vsyncadd [#allocation3], 4294967280 }
 0x111   :  { %309 = vsyncpa [#allocation3], 1 }

</bundles_post_ra>
